<compile_context>
chip_gen: v7x
topology: tpu7x:2x2x1
jax: 0.10.0
libtpu: 0.0.40
codegen_flags: <defaults>
</compile_context>

<pallas_src>
import functools

import jax
import jax.numpy as jnp
from jax.experimental import pallas as pl
from jax.experimental.pallas import tpu as pltpu

LN_EPS = 1e-5


def output_layer_kernel(x_ref, w1_ref, b1_ref, g_ref, wfu_ref, cc_ref, o_ref,
                        *, n_real, inv_cn, ln_eps):
    # x_ref : (block_b, c*T, n_pad)   per-step batch block, lane-dense nodes
    # w1_ref: (c, c*T)                tconv1 weight (matches ci*T + t row order of x)
    # b1_ref: (c, n_pad)              tconv1 bias, pre-broadcast, zero on padded lanes
    # g_ref : (c, n_pad)              gamma.T, zero on padded lanes
    # wfu_ref: (pred_n, c)            fused (fc @ tconv2) weight
    # cc_ref : (pred_n, n_pad)        fused additive constant (beta/b2/bf folded)
    # o_ref : (block_b, pred_n, n_pad)
    block_b = x_ref.shape[0]
    c, n_pad = b1_ref.shape

    # Hoisted once per grid step (not per batch in the loop below).
    w1 = w1_ref[...]
    b1 = b1_ref[...]
    gamma = g_ref[...]
    wfu = wfu_ref[...]
    cconst = cc_ref[...]
    lane_mask = jax.lax.broadcasted_iota(jnp.int32, (c, n_pad), 1) < n_real

    # block_b is a small static count -> unrolled loop; each iteration is two
    # lane-dense (..., 128) MXU matmuls + a whole-slab LayerNorm.
    for b in range(block_b):
        xb = x_ref[b]                                              # (c*T, n_pad)

        # tconv1: (c, c*T) @ (c*T, n_pad).  x pad-lanes are zero and b1 is
        # pre-masked, so y1 is exactly zero on padded node columns.
        y1 = jnp.dot(w1, xb, preferred_element_type=jnp.float32) + b1   # (c, n_pad)

        # LayerNorm([n, c]): biased mean/var over the n*c real entries.
        mean = jnp.sum(y1) * inv_cn
        centered = y1 - mean
        var = jnp.sum(jnp.where(lane_mask, centered * centered, 0.0)) * inv_cn
        inv = jax.lax.rsqrt(var + ln_eps)
        y = centered * (inv * gamma)          # gamma pad-lanes = 0 -> pad stays 0

        # fused tconv2 + fc: one matmul plus the precomputed additive constant.
        out = jnp.dot(wfu, y, preferred_element_type=jnp.float32) + cconst
        o_ref[b] = out.astype(o_ref.dtype)


def _round_up(v, m):
    return ((v + m - 1) // m) * m


def output_layer_pallas(x, params, *, block_b=None):
    """x: (B, c, T, n) float32 (NCHW). Returns (B, pred_n, n)."""
    B, c, T, n = x.shape
    w1 = params["w1"].reshape(c, c * T)          # (c, c*T), row index ci*T + t
    b1 = params["b1"]                            # (c,)
    gamma = params["gamma"]                      # (n, c)
    beta = params["beta"]                        # (n, c)
    w2 = params["w2"].reshape(c, c)
    b2 = params["b2"]                            # (c,)
    wf = params["wf"].reshape(-1, c)             # (pred_n, c)
    bf = params["bf"]                            # (pred_n,)
    pred_n = wf.shape[0]

    # Lane-dense node axis.
    n_pad = _round_up(n, 128)

    # Batch blocking: amortize per-step overhead but keep >= 2 parallel grid
    # steps so v7x's second TensorCore has work (neutral on v5e/v6e).
    if block_b is None:
        block_b = 1 if B <= 1 else max(1, min(8, (B + 1) // 2))
    grid_b = -(-B // block_b)                    # cdiv
    b_padded = grid_b * block_b

    # ---- wrapper-side glue (all cheap XLA ops) ----
    x_flat = x.reshape(B, c * T, n)
    x_p = jnp.pad(x_flat, ((0, b_padded - B), (0, 0), (0, n_pad - n)))

    # Fuse fc(tconv2(.)):  wf @ (w2 @ y + b2) + bf == (wf@w2) @ y + (wf@b2 + bf)
    w_fused = wf @ w2                                        # (pred_n, c)
    b_fused = wf @ b2.reshape(c, 1) + bf.reshape(pred_n, 1)  # (pred_n, 1)

    # Fold beta through the fused weight into a single additive constant.
    beta_t = jnp.pad(beta.T, ((0, 0), (0, n_pad - n)))       # (c, n_pad)
    cconst = w_fused @ beta_t + b_fused                      # (pred_n, n_pad)

    gamma_pad = jnp.pad(gamma.T, ((0, 0), (0, n_pad - n)))   # (c, n_pad), 0 on pad
    b1_row = jnp.pad(jnp.broadcast_to(b1.reshape(c, 1), (c, n)),
                     ((0, 0), (0, n_pad - n)))               # (c, n_pad), 0 on pad

    kernel = functools.partial(output_layer_kernel,
                               n_real=n, inv_cn=1.0 / (c * n), ln_eps=LN_EPS)

    full = lambda shape: pl.BlockSpec(shape, lambda g: tuple(0 for _ in shape))

    out = pl.pallas_call(
        kernel,
        out_shape=jax.ShapeDtypeStruct((b_padded, pred_n, n_pad), x.dtype),
        grid_spec=pltpu.PrefetchScalarGridSpec(
            num_scalar_prefetch=0,
            grid=(grid_b,),
            in_specs=[
                pl.BlockSpec((block_b, c * T, n_pad), lambda g: (g, 0, 0)),
                full((c, c * T)),
                full((c, n_pad)),
                full((c, n_pad)),
                full((pred_n, c)),
                full((pred_n, n_pad)),
            ],
            out_specs=pl.BlockSpec((block_b, pred_n, n_pad), lambda g: (g, 0, 0)),
        ),
        compiler_params=pltpu.CompilerParams(
            dimension_semantics=("parallel",)),
        # TODO(synk): on v6e/v7x a bf16 x/w1 path (f32 accumulate + f32 LN stats)
        # would halve HBM traffic at production shapes; kept f32 for v5e safety.
    )(x_p, w1, b1_row, gamma_pad, w_fused, cconst)

    return out[:B, :, :n]


def output_layer_ref(x, params):
    """Pure-JAX reference (unfused, mirrors the PyTorch module)."""
    B, c, T, n = x.shape
    w1 = params["w1"].reshape(c, c * T)
    y1 = jnp.einsum("ok,bkn->bon", w1, x.reshape(B, c * T, n)) + params["b1"][None, :, None]
    y1_ncf = jnp.transpose(y1, (0, 2, 1))                    # (B, n, c)
    mean = jnp.mean(y1_ncf, axis=(1, 2), keepdims=True)
    var = jnp.mean((y1_ncf - mean) ** 2, axis=(1, 2), keepdims=True)
    y_ln = (y1_ncf - mean) / jnp.sqrt(var + LN_EPS) * params["gamma"] + params["beta"]
    y_ln = jnp.transpose(y_ln, (0, 2, 1))                    # (B, c, n)
    w2 = params["w2"].reshape(c, c)
    y2 = jnp.einsum("oc,bcn->bon", w2, y_ln) + params["b2"][None, :, None]
    wf = params["wf"].reshape(-1, c)
    out = jnp.einsum("pc,bcn->bpn", wf, y2) + params["bf"][None, :, None]
    return out


def _make_params(key, c, T, n, pred_n):
    ks = jax.random.split(key, 9)
    return {
        "w1": jax.random.normal(ks[0], (c, c, T, 1), dtype=jnp.float32) * 0.1,
        "b1": jax.random.normal(ks[1], (c,), dtype=jnp.float32) * 0.1,
        "gamma": jnp.ones((n, c), dtype=jnp.float32)
                 + 0.05 * jax.random.normal(ks[2], (n, c), dtype=jnp.float32),
        "beta": 0.05 * jax.random.normal(ks[3], (n, c), dtype=jnp.float32),
        "w2": jax.random.normal(ks[4], (c, c, 1, 1), dtype=jnp.float32) * 0.2,
        "b2": jax.random.normal(ks[5], (c,), dtype=jnp.float32) * 0.1,
        "wf": jax.random.normal(ks[6], (pred_n, c, 1, 1), dtype=jnp.float32) * 0.2,
        "bf": jax.random.normal(ks[7], (pred_n,), dtype=jnp.float32) * 0.1,
    }


if __name__ == "__main__":
    key = jax.random.PRNGKey(0)

    # Case 1: shapes consistent with the module (B=2, c=4, T=8, n=16, pred_n=3).
    B, c, T, n, pred_n = 2, 4, 8, 16, 3
    k0, k1, key = jax.random.split(key, 3)
    x = jax.random.normal(k0, (B, c, T, n), dtype=jnp.float32)
    params = _make_params(k1, c, T, n, pred_n)
    out = jax.block_until_ready(output_layer_pallas(x, params))
    ref = output_layer_ref(x, params)
    assert out.shape == (B, pred_n, n), out.shape
    assert jnp.allclose(out, ref, atol=1e-4, rtol=1e-4), \
        float(jnp.max(jnp.abs(out - ref)))

    # Case 2: non-divisible batch + node padding path (B=7, n=20, block_b=4).
    B2, n2 = 7, 20
    k2, k3, key = jax.random.split(key, 3)
    x2 = jax.random.normal(k2, (B2, c, T, n2), dtype=jnp.float32)
    params2 = _make_params(k3, c, T, n2, pred_n)
    out2 = jax.block_until_ready(output_layer_pallas(x2, params2))
    ref2 = output_layer_ref(x2, params2)
    assert out2.shape == (B2, pred_n, n2), out2.shape
    assert jnp.allclose(out2, ref2, atol=1e-4, rtol=1e-4), \
        float(jnp.max(jnp.abs(out2 - ref2)))

    print("KERNEL_OK")
</pallas_src>

<mosaic_0001>
module attributes {stable_mosaic.version = 11 : i64} {
  func.func @output_layer_kernel(%arg0: i32, %arg1: memref<1x32x128xf32, #tpu.memory_space<vmem>>, %arg2: memref<4x32xf32, #tpu.memory_space<vmem>>, %arg3: memref<4x128xf32, #tpu.memory_space<vmem>>, %arg4: memref<4x128xf32, #tpu.memory_space<vmem>>, %arg5: memref<3x4xf32, #tpu.memory_space<vmem>>, %arg6: memref<3x128xf32, #tpu.memory_space<vmem>>, %arg7: memref<1x3x128xf32, #tpu.memory_space<vmem>>) attributes {dimension_semantics = [#tpu.dimension_semantics<parallel>], iteration_bounds = array<i64: 2>, scalar_prefetch = 0 : i64, scratch_operands = 0 : i64, tpu.core_type = #tpu.core_type<tc>, window_params = [{transform_indices = @transform_0, window_bounds = array<i64: 1, 32, 128>}, {pipeline_mode = #tpu.pipeline_mode<synchronous>, transform_indices = @transform_1, window_bounds = array<i64: 4, 32>}, {pipeline_mode = #tpu.pipeline_mode<synchronous>, transform_indices = @transform_2, window_bounds = array<i64: 4, 128>}, {pipeline_mode = #tpu.pipeline_mode<synchronous>, transform_indices = @transform_3, window_bounds = array<i64: 4, 128>}, {pipeline_mode = #tpu.pipeline_mode<synchronous>, transform_indices = @transform_4, window_bounds = array<i64: 3, 4>}, {pipeline_mode = #tpu.pipeline_mode<synchronous>, transform_indices = @transform_5, window_bounds = array<i64: 3, 128>}, {transform_indices = @transform_6, window_bounds = array<i64: 1, 3, 128>}]} {
    %c0 = arith.constant 0 : index
    %c0_0 = arith.constant 0 : index
    %0 = vector.load %arg2[%c0, %c0_0] : memref<4x32xf32, #tpu.memory_space<vmem>>, vector<4x32xf32>
    %c0_1 = arith.constant 0 : index
    %c0_2 = arith.constant 0 : index
    %1 = vector.load %arg3[%c0_1, %c0_2] : memref<4x128xf32, #tpu.memory_space<vmem>>, vector<4x128xf32>
    %c0_3 = arith.constant 0 : index
    %c0_4 = arith.constant 0 : index
    %2 = vector.load %arg4[%c0_3, %c0_4] : memref<4x128xf32, #tpu.memory_space<vmem>>, vector<4x128xf32>
    %c0_5 = arith.constant 0 : index
    %c0_6 = arith.constant 0 : index
    %3 = vector.load %arg5[%c0_5, %c0_6] : memref<3x4xf32, #tpu.memory_space<vmem>>, vector<3x4xf32>
    %c0_7 = arith.constant 0 : index
    %c0_8 = arith.constant 0 : index
    %4 = vector.load %arg6[%c0_7, %c0_8] : memref<3x128xf32, #tpu.memory_space<vmem>>, vector<3x128xf32>
    %5 = tpu.iota {dimensions = array<i32: 1>} : vector<4x128xi32>
    %c16_i32 = arith.constant 16 : i32
    %6 = vector.broadcast %c16_i32 : i32 to vector<4x128xi32>
    %7 = arith.cmpi slt, %5, %6 : vector<4x128xi32>
    %c0_9 = arith.constant 0 : index
    %c0_10 = arith.constant 0 : index
    %c0_11 = arith.constant 0 : index
    %8 = vector.load %arg1[%c0_9, %c0_10, %c0_11] : memref<1x32x128xf32, #tpu.memory_space<vmem>>, vector<1x32x128xf32>
    %9 = vector.shape_cast %8 : vector<1x32x128xf32> to vector<32x128xf32>
    %cst = arith.constant dense<0.000000e+00> : vector<4x128xf32>
    %10 = tpu.matmul %0, %9, %cst {dimension_numbers = #tpu.dot_dimension_numbers<[1], [0], [0], [1], [0, 0, 1, 1], [], []>} : vector<4x32xf32>, vector<32x128xf32>, vector<4x128xf32> -> vector<4x128xf32>
    %11 = arith.addf %10, %1 : vector<4x128xf32>
    %12 = vector.shape_cast %11 : vector<4x128xf32> to vector<1x4x128xf32>
    %cst_12 = arith.constant dense<0.000000e+00> : vector<1xf32>
    %13 = vector.multi_reduction <add>, %12, %cst_12 [1, 2] : vector<1x4x128xf32> to vector<1xf32>
    %14 = vector.shape_cast %13 : vector<1xf32> to vector<1x1x1xf32>
    %15 = vector.extract %14[0, 0, 0] : f32 from vector<1x1x1xf32>
    %cst_13 = arith.constant 1.562500e-02 : f32
    %16 = arith.mulf %15, %cst_13 : f32
    %17 = vector.broadcast %16 : f32 to vector<4x128xf32>
    %18 = arith.subf %11, %17 : vector<4x128xf32>
    %19 = arith.mulf %18, %18 : vector<4x128xf32>
    %cst_14 = arith.constant 0.000000e+00 : f32
    %20 = vector.broadcast %cst_14 : f32 to vector<4x128xf32>
    %21 = arith.select %7, %19, %20 : vector<4x128xi1>, vector<4x128xf32>
    %22 = vector.shape_cast %21 : vector<4x128xf32> to vector<1x4x128xf32>
    %cst_15 = arith.constant dense<0.000000e+00> : vector<1xf32>
    %23 = vector.multi_reduction <add>, %22, %cst_15 [1, 2] : vector<1x4x128xf32> to vector<1xf32>
    %24 = vector.shape_cast %23 : vector<1xf32> to vector<1x1x1xf32>
    %25 = vector.extract %24[0, 0, 0] : f32 from vector<1x1x1xf32>
    %cst_16 = arith.constant 1.562500e-02 : f32
    %26 = arith.mulf %25, %cst_16 : f32
    %cst_17 = arith.constant 9.99999974E-6 : f32
    %27 = arith.addf %26, %cst_17 : f32
    %28 = math.rsqrt %27 : f32
    %29 = vector.broadcast %28 : f32 to vector<4x128xf32>
    %30 = arith.mulf %29, %2 : vector<4x128xf32>
    %31 = arith.mulf %18, %30 : vector<4x128xf32>
    %cst_18 = arith.constant dense<0.000000e+00> : vector<3x128xf32>
    %32 = tpu.matmul %3, %31, %cst_18 {dimension_numbers = #tpu.dot_dimension_numbers<[1], [0], [0], [1], [0, 0, 1, 1], [], []>} : vector<3x4xf32>, vector<4x128xf32>, vector<3x128xf32> -> vector<3x128xf32>
    %33 = arith.addf %32, %4 : vector<3x128xf32>
    %c0_19 = arith.constant 0 : index
    %c0_20 = arith.constant 0 : index
    %c0_21 = arith.constant 0 : index
    %34 = vector.load %arg7[%c0_19, %c0_20, %c0_21] : memref<1x3x128xf32, #tpu.memory_space<vmem>>, vector<1x3x128xf32>
    %35 = vector.shape_cast %34 : vector<1x3x128xf32> to vector<3x128xf32>
    %36 = vector.shape_cast %33 : vector<3x128xf32> to vector<1x3x128xf32>
    tpu.vector_store %arg7[%c0_19, %c0_20, %c0_21], %36 {strides = array<i32>} : memref<1x3x128xf32, #tpu.memory_space<vmem>>, vector<1x3x128xf32>,
    return
  }
  func.func @transform_0(%arg0: i32) -> (i32, i32, i32) {
    %c0_i32 = arith.constant 0 : i32
    %c0_i32_0 = arith.constant 0 : i32
    %c0_i32_1 = arith.constant 0 : i32
    return %arg0, %c0_i32, %c0_i32_0 : i32, i32, i32
  }
  func.func @transform_1(%arg0: i32) -> (i32, i32) {
    %c0_i32 = arith.constant 0 : i32
    %c0_i32_0 = arith.constant 0 : i32
    %c0_i32_1 = arith.constant 0 : i32
    return %c0_i32, %c0_i32_0 : i32, i32
  }
  func.func @transform_2(%arg0: i32) -> (i32, i32) {
    %c0_i32 = arith.constant 0 : i32
    %c0_i32_0 = arith.constant 0 : i32
    %c0_i32_1 = arith.constant 0 : i32
    return %c0_i32, %c0_i32_0 : i32, i32
  }
  func.func @transform_3(%arg0: i32) -> (i32, i32) {
    %c0_i32 = arith.constant 0 : i32
    %c0_i32_0 = arith.constant 0 : i32
    %c0_i32_1 = arith.constant 0 : i32
    return %c0_i32, %c0_i32_0 : i32, i32
  }
  func.func @transform_4(%arg0: i32) -> (i32, i32) {
    %c0_i32 = arith.constant 0 : i32
    %c0_i32_0 = arith.constant 0 : i32
    %c0_i32_1 = arith.constant 0 : i32
    return %c0_i32, %c0_i32_0 : i32, i32
  }
  func.func @transform_5(%arg0: i32) -> (i32, i32) {
    %c0_i32 = arith.constant 0 : i32
    %c0_i32_0 = arith.constant 0 : i32
    %c0_i32_1 = arith.constant 0 : i32
    return %c0_i32, %c0_i32_0 : i32, i32
  }
  func.func @transform_6(%arg0: i32) -> (i32, i32, i32) {
    %c0_i32 = arith.constant 0 : i32
    %c0_i32_0 = arith.constant 0 : i32
    %c0_i32_1 = arith.constant 0 : i32
    return %arg0, %c0_i32, %c0_i32_0 : i32, i32, i32
  }
}

</mosaic_0001>

<bundles_post_ra>
// kernel: tpu_custom_call.1
= control target key start
LH: loop header
LB: loop body
LE: loop exit
PB: predicated region body
PF: predicated region fallthrough
CT: control target
= control target key end

     0   :  { %11 = vsyncpa [#allocation3], 0  ;;  %s968_s0 = inlined_call_operand.hbm [shape: f32[2,32,128], index: 0, kind: input, shape index: {}]   ;;  %s969_s1 = inlined_call_operand.hbm [shape: f32[4,32], index: 1, kind: input, shape index: {}]   ;;  %s970_s2 = inlined_call_operand.vmem [shape: f32[4,128], index: 2, kind: input, shape index: {}]   ;;  %s971_s3 = inlined_call_operand.vmem [shape: f32[4,128], index: 3, kind: input, shape index: {}]   ;;  %s972_s4 = inlined_call_operand.vmem [shape: f32[3,4], index: 4, kind: input, shape index: {}]   ;;  %s973_s5 = inlined_call_operand.vmem [shape: f32[3,128], index: 5, kind: input, shape index: {}]   ;;  %s974_s6 = inlined_call_operand.vmem [shape: f32[2,3,128], index: 6, kind: output, shape index: {}]  }
   0x1   :  { %13 = vsyncpa [#allocation3 + $0x1], 0 }
   0x2   :  { %14 = vsyncpa [#allocation5], 0  ;;  %s805_s21 = smov 0   ;;  %s807_s22 = smov 0  }
   0x3   :  { %s809_s23 = smov 0   ;;  %s811_s24 = smov 0  }
   0x4 LB: > { %s824_s25 = sadd.s32 4294967295, %s761_s24   ;;  %s827_s26 = sadd.s32 1, %s761_s24   ;;  %s761_s24 = sphi %s811_s24, %s992_s24   ;;  %s757_s23 = sphi %s809_s23, %s991_s23   ;;  %s753_s22 = sphi %s807_s22, %s990_s22   ;;  %s749_s21 = sphi %s805_s21, %s989_s21  }
   0x5   : > { %s24_s27 = ssub.s32 %s761_s24, %s827_s26  ;;  %s27_s28 = sadd.s32 1, %s757_s23 }
   0x6   : > { %p25_p0 = scmp.eq.s32.totalorder %s24_s27, 0  ;;  %p34_p1 = scmp.ne.s32.totalorder %s757_s23, %s753_s22 }
   0x7   : > { %p35_p2 = scmp.eq.s32.totalorder %s761_s24, 0  ;;  %p40_p3 = scmp.ne.s32.totalorder %s753_s22, %s749_s21 }
   0x8   : > { %s837_s29 = scalar_select %p25_p0, %s757_s23, %s27_s28  }
   0x9   : > { %p839_p4 = por %p35_p2, %p34_p1  ;;  %p975_p5 = scmp.eq.s32.totalorder %s824_s25, 0 }
   0xa   : > { %p557_p6 = scmp.ge.s32.totalorder %s761_s24, 1  ;;  %p182_p7 = scmp.lt.s32.totalorder %s761_s24, 3 }
   0xb   : > { %p848_p8 = por %p975_p5, %p40_p3  ;;  %s763_s9 = smov [#allocation4]  }
   0xc   : > { %p852_p9 = pnand %p557_p6, %p182_p7  ;;  %s195_s10 = sshll.u32 %s763_s9, 4  ;;  %s196_s10 = int_to_ptr.vmem [resolvable:$true] %s195_s10 }
   0xd   : > { %s980_s7 = scalar_select %p848_p8, 1, 0 }
   0xe   : > { %s981_s8 = scalar_select %p852_p9, 1, 0 }
   0xf   : > { %p614_p10 = pneg %p852_p9  ;;  %p623_p11 = scmp.lt.s32.totalorder %s761_s24, 2 }
  0x10   : > { %s218_s11 = sand.u32 1, %s757_s23   ;;  %s665_s17 = scalar_lea.hbm %s969_s1, 64 }
  0x11   : > { %p862_p12 = pnand %p614_p10, %p975_p5  ;;  %p868_p13 = pnand %p623_p11, %p839_p4 }
  0x12   : > { %s560_s14 = sshll.u32 %s218_s11, 5  ;;  %p666_p0 = scmp.ne.s32.totalorder %s969_s1, %s665_s17 }
  0x13   : > { %s983_s13 = scalar_select %p868_p13, 1, 0 }
  0x14   : > { %p667_p1 = pneg %p862_p12  ;;  %p672_p4 = scmp.lt.u32.totalorder %s665_s17, %s969_s1 }
  0x16   : > { %p668_p2 = pnand %p667_p1, %p666_p0 }
  0x18   : > { %p669_p3 = pneg %p668_p2 }
  0x1a   : > { %p674_p6 = pnand %p672_p4, %p669_p3 }
  0x1c   : > { %677 = shalt.err (!%p674_p6)
}
  0x1d   : > { %s678_s27 = scalar_lea.vmem %s196_s10, 64  ;;  %p686_p5 = scmp.lt.s32.totalorder %s196_s10, %s196_s10 }
  0x1e   : > { %p679_p7 = scmp.ne.s32.totalorder %s196_s10, %s678_s27  ;;  %p687_p8 = scmp.lt.s32.totalorder %s678_s27, %s678_s27 }
  0x20   : > { %p681_p10 = pnand %p679_p7, %p667_p1  ;;  %p688_p9 = por %p687_p8, %p686_p5 }
  0x22   : > { %p682_p11 = pneg %p681_p10 }
  0x24   : > { %p689_p13 = pnand %p688_p9, %p682_p11 }
  0x26   : > { %692 = shalt.err (!%p689_p13)
}
  0x27   : > { %617 = dma.hbm_to_vmem [thread:$0]  (!%p862_p12), %s969_s1, 64, %s196_s10, [#allocation5]  }
  0x28   : > { %s572_s9 = sshll.u32 %s761_s24, 9  ;;  %s222_s18 = scalar_lea.vmem [#allocation2], %s560_s14 }
  0x29   : > { %s892_s17 = scalar_lea.hbm %s968_s0, %s572_s9  ;;  %s229_s19 = sshll.u32 %s222_s18, 4  ;;  %s894_s19 = int_to_ptr.vmem [resolvable:$true] %s229_s19 }
  0x2a   : > { %s896_s12 = scalar_lea.sflag [#allocation3], %s218_s11  ;;  %s693_s20 = scalar_lea.hbm %s892_s17, 512 }
  0x2b   : > { %p694_p5 = scmp.ne.s32.totalorder %s892_s17, %s693_s20  ;;  %p984_p8 = scmp.ne.s32.totalorder %s983_s13, 0 }
  0x2c   : > { %s698_s21 = scalar_lea.hbm %s968_s0, 1024  ;;  %p699_p0 = scmp.lt.u32.totalorder %s892_s17, %s968_s0 }
  0x2d   : > { %p695_p9 = pneg %p984_p8  ;;  %p700_p1 = scmp.lt.u32.totalorder %s698_s21, %s693_s20 }
  0x2e   : > { %p702_p3 = scmp.lt.u32.totalorder %s693_s20, %s892_s17 }
  0x2f   : > { %p696_p12 = pnand %p695_p9, %p694_p5  ;;  %p701_p2 = por %p700_p1, %p699_p0 }
  0x31   : > { %p697_p13 = pneg %p696_p12  ;;  %p703_p4 = por %p702_p3, %p701_p2 }
  0x33   : > { %p704_p6 = pnand %p703_p4, %p697_p13 }
  0x35   : > { %707 = shalt.err (!%p704_p6)
}
  0x36   : > { %s708_s11 = scalar_lea.vmem %s894_s19, 512  ;;  %s764_s14 = smov [#allocation2]  }
  0x37   : > { %p709_p7 = scmp.ne.s32.totalorder %s894_s19, %s708_s11  ;;  %s713_s30 = sshll.u32 %s764_s14, 4  ;;  %s714_s30 = int_to_ptr.vmem [resolvable:$false] %s713_s30 }
  0x38   : > { %s715_s9 = scalar_lea.vmem %s714_s30, 1024  ;;  %p716_p5 = scmp.lt.s32.totalorder %s894_s19, %s714_s30 }
  0x39   : > { %p711_p10 = pnand %p709_p7, %p695_p9  ;;  %p717_p12 = scmp.lt.s32.totalorder %s715_s9, %s708_s11 }
  0x3b   : > { %p712_p11 = pneg %p711_p10  ;;  %p718_p0 = por %p717_p12, %p716_p5 }
  0x3d   : > { %p719_p1 = pnand %p718_p0, %p712_p11 }
  0x3f   : > { %722 = shalt.err (!%p719_p1)
}
  0x40   : > { %s765_s15 = smov 128   ;;  %s766_s16 = smov 8  }
  0x41   : > { %621 = dma.hbm_to_vmem [thread:$0]  (!%p984_p8), %s892_s17, 512, %s894_s19, %s896_s12, %s765_s15, %s765_s15, %s766_s16  }
  0x42   : > { %p985_p9 = scmp.ne.s32.totalorder %s981_s8, 0 }
  0x43   : > { %s243_s18 = sand.u32 (!%p985_p9), 1, %s753_s22   ;;  %p986_p13 = scmp.ne.s32.totalorder (!%p985_p9), %s980_s7, 0 }
  0x44   : > { %241 = sbr.rel (%p985_p9) target bundleno = 1008 (0x3f0), region = 44  ;;  %s564_s20 = sshll.u32 (!%p985_p9), %s243_s18, 5 }
  0x45   : > { %s244_s24 = scalar_lea.sflag (!%p985_p9), [#allocation3], %s243_s18  ;;  %s247_s10 = scalar_lea.vmem (!%p985_p9), [#allocation2], %s564_s20 }
  0x4b   : > { %740 = dma.done.wait (%p986_p13), %s244_s24, 512  }
  0x4c   : > { %742 = vsyncadd (%p986_p13), %s244_s24, 4294966784  ;;  %p987_p2 = scmp.eq.s32.totalorder %s824_s25, 0 }
  0x4e   : > { %744 = dma.done.wait (%p987_p2), [#allocation5], 64   ;;  %p988_p3 = pmov %p987_p2 }
  0x4f   : > { %v767_v0 = vmov 0.0|0.0   ;;  %vm768_vm0 = vmmov 0   ;;  %v769_v1 = vmov 0.0   ;;  %v291_v2 = vld [vmem:[%s247_s10] sm:$0xff]  ;;  %v292_v3 = vld [vmem:[%s247_s10 + $0x8] sm:$0xff]  ;;  %v293_v4 = vld [vmem:[%s247_s10 + $0x10] sm:$0xff]  ;;  %v288_v21 = vlaneseq }
  0x50   : > { %746 = vsyncadd (%p988_p3), [#allocation5], 4294967232  ;;  %596 = vmatprep.subr.bf16.mxu0 %v767_v0  ;;  %588 = vmatprep.mubr.msk.f32.mxu0 %vm768_vm0, %v769_v1  ;;  %v597_v5 = vpack.c.bf16 %v292_v3, %v291_v2  ;;  %v294_v6 = vld [vmem:[%s247_s10 + $0x18] sm:$0xff]  ;;  %v283_v8 = vld [vmem:[#allocation4] sm:$0xf]  ;;  %vm295_vm1 = vcmask 261120  }
  0x51   : > { %591 = vmatprep.subr.mxu1 %v769_v1  ;;  %593 = vmatprep.mubr.msk.f32.mxu1 %vm768_vm0, %v769_v1  ;;  %v600_v7 = vpack.c.bf16 %v294_v6, %v293_v4  ;;  %v284_v9 = vld [vmem:[%s970_s2] sm:$0xf]  ;;  %vm369_vm2 = vcmask 1043456   ;;  %v289_v22 = vand.u32 127, %v288_v21  ;;  %vm403_vm4 = vcmask 31744   ;;  %p279_p8 = scmp.lt.s32.totalorder %s824_s25, 1 }
  0x52   : > { %598 = vmatpush3.bf16.msra.mxu0 %v597_v5  ;;  %v285_v37 = vld [vmem:[%s971_s3] sm:$0xf] }
  0x53   : > { %599 = vmatprep.subr.bf16.mxu0 %v767_v0  ;;  %vm290_vm3 = vcmp.lt.s32.totalorder %v289_v22, 16  ;;  %v286_v41 = vld [vmem:[%s972_s4] sm:$0x7]  ;;  %s994_s25 = smov (!%p279_p8, %s824_s25), 1 }
  0x54   : > { %s566_s9 = sshll.u32 %s994_s25, 2  ;;  %v287_v42 = vld [vmem:[%s973_s5] sm:$0x7] }
  0x55   : > { %s282_s24 = scalar_lea.vmem %s974_s6, %s566_s9 }
  0x56   : > { %601 = vmatpush3.bf16.msra.mxu0 %v600_v7 }
  0x59   : > { %589 = vmatmul.mubr.msk.f32.vlgmr.msra.gmra.mrb[0].mxu0 %vm295_vm1, %v283_v8 }
 0x12c   : > { %v365_v10 = vpop.f32.mrb[0].mxu0 }
 0x12d   : > { %v366_v11 = vadd.f32 %v365_v10, %v284_v9  ;;  %v590_v12 = vpop.f32.mrb[1].mxu0 }
 0x12f   : > { %v370_v13 = vsel %vm369_vm2, %v366_v11, 0.0 }
 0x130   : > { %371 = vadd.xlane.f32.xlu0 %v370_v13 }
 0x1bd   : > { %v372_v14 = vpop.xlane.xlu0 %371 }
 0x1be   : > { %v373_v15 = vrot.slane %v372_v14, 4 }
 0x1c0   : > { %v374_v16 = vadd.f32 %v373_v15, %v372_v14 }
 0x1c2   : > { %v375_v17 = vrot.slane %v374_v16, 2 }
 0x1c4   : > { %v376_v18 = vadd.f32 %v375_v17, %v374_v16 }
 0x1c6   : > { %v377_v19 = vrot.slane %v376_v18, 1 }
 0x1c8   : > { %v378_v20 = vadd.f32 %v377_v19, %v376_v18 }
 0x1ca   : > { %602 = vpush %v378_v20 }
 0x1fb   : > { %s603_s13 = spop %602 }
 0x1fc   : > { %s380_s17 = smul.f32 0.015625, %s603_s13 }
 0x1fe   : > { %v381_v23 = vstv %s380_s17 }
 0x1ff   : > { %v382_v24 = vsub.f32 %v366_v11, %v381_v23 }
 0x201   : > { %v383_v25 = vmul.f32 %v382_v24, %v382_v24 }
 0x203   : > { %v384_v26 = vsel %vm290_vm3, %v383_v25, 0.0 }
 0x204   : > { %v385_v27 = vsel %vm369_vm2, %v384_v26, 0.0 }
 0x205   : > { %386 = vadd.xlane.f32.xlu0 %v385_v27 }
 0x292   : > { %v387_v28 = vpop.xlane.xlu0 %386 }
 0x293   : > { %v388_v29 = vrot.slane %v387_v28, 4 }
 0x295   : > { %v389_v30 = vadd.f32 %v388_v29, %v387_v28 }
 0x297   : > { %v390_v31 = vrot.slane %v389_v30, 2 }
 0x299   : > { %v391_v32 = vadd.f32 %v390_v31, %v389_v30 }
 0x29b   : > { %v392_v33 = vrot.slane %v391_v32, 1 }
 0x29d   : > { %v393_v34 = vadd.f32 %v392_v33, %v391_v32 }
 0x29f   : > { %604 = vpush %v393_v34 }
 0x2d0   : > { %s605_s19 = spop %604 }
 0x2d1   : > { %s395_s12 = smul.f32 0.015625, %s605_s19 }
 0x2d3   : > { %s396_s21 = sadd.f32 1e-05, %s395_s12 }
 0x2d5   : > { %v397_v35 = vstv %s396_s21 }
 0x2d6   : > { %663 = vrsqrt.f32 %v397_v35 }
 0x2e0   : > { %v664_v36 = vpop.eup %663 }
 0x2e1   : > { %606 = vpush %v664_v36 }
 0x312   : > { %s607_s11 = spop %606 }
 0x313   : > { %v400_v38 = vstv %s607_s11 }
 0x314   : > { %v401_v39 = vmul.f32 %v400_v38, %v285_v37 }
 0x316   : > { %v402_v40 = vmul.f32 %v401_v39, %v382_v24 }
 0x318   : > { %592 = vmatpush3.msk.msra.mxu1 %vm369_vm2, %v402_v40 }
 0x319   : > { %594 = vmatmul.mubr.msk.f32.vlgmr.msra.gmra.mrb[0].mxu1 %vm403_vm4, %v286_v41 }
 0x3ec   : > { %v476_v43 = vpop.f32.mrb[0].mxu1 }
 0x3ed   : > { %v477_v44 = vadd.f32 %v476_v43, %v287_v42  ;;  %v595_v45 = vpop.f32.mrb[1].mxu1 }
 0x3ef   : > { %480 = vst [vmem:[%s282_s24] sm:$0x7] %v477_v44 }
 0x3f0 PF: > { %p17_p4 = scmp.ge.s32.totalorder %s827_s26, 4   ;;  %s989_s21 = smov %s753_s22 }
 0x3f1   : > { %s990_s22 = smov %s757_s23  ;;  %s991_s23 = smov %s837_s29 }
 0x3f2   : > { %s992_s24 = smov %s827_s26  ;;  %19 = sbr.rel (!%p17_p4) target bundleno = 4 (0x4), region = 88 }
 0x3f9   :  { %500 = vsyncpa [#allocation3], 1 }
 0x3fa   :  { %502 = vsyncpa [#allocation3 + $0x1], 1 }
 0x3fb   :  { %503 = vsyncpa [#allocation5], 1 }

</bundles_post_ra>
